<compile_context>
chip_gen: v6e
topology: v6e:2x2x1
jax: 0.10.0
libtpu: 0.0.40
codegen_flags: <defaults>
</compile_context>

<pallas_src>
import math
import functools

import jax
import jax.numpy as jnp
from jax import lax
from jax.experimental import pallas as pl
from jax.experimental.pallas import tpu as pltpu

_INV_SQRT2 = 1.0 / math.sqrt(2.0)


def _round_up(x, m):
    return (x + m - 1) // m * m


def _vmem_limit_bytes():
    """Scoped-VMEM limit with headroom: ~48 MiB on v7x (64 MiB/TC), 96 MiB on v5e/v6e."""
    cap = 64 * 1024 * 1024
    try:
        info = pltpu.get_tpu_info()
        cap = int(getattr(info, "vmem_capacity_bytes", cap)) or cap
    except Exception:
        pass
    return min(cap * 3 // 4, 96 * 1024 * 1024)


def _cap_tm_for_vmem(tm, h_in, h_out, x_itemsize, out_itemsize, w_bytes, align,
                     vmem_limit):
    """Shrink the row tile so double-buffered tiles + fp32 temporaries + the
    (possibly double-buffered) resident weight fit in the scoped VMEM budget."""
    budget = int(vmem_limit * 0.8) - 2 * w_bytes - 2 * 8 * max(h_in, h_out) * 4
    per_row = (2 * h_in * x_itemsize          # double-buffered x tile
               + 2 * h_out * out_itemsize     # double-buffered out tile
               + 6 * h_out * 4)               # fp32 temporaries (h, h*h, y, ...)
    if budget <= per_row:
        return min(tm, align)
    cap = max(align, (budget // per_row) // align * align)
    return min(tm, cap)


def _transform_kernel(x_ref, w_ref, p_ref, o_ref, *, eps, matmul_dtype):
    # x_ref: [tm, H_in] native dtype     w_ref: [H_in, H_out] (pre-transposed)
    # p_ref: [3, H_out] fp32  (rows: bias, gamma, beta)     o_ref: [tm, H_out]
    x = x_ref[...]
    if matmul_dtype is not None:
        x = x.astype(matmul_dtype)       # VPU cast, hidden under the MXU

    # --- dense (MXU): y = x @ W_t, fp32 accumulation ---
    h = lax.dot_general(x, w_ref[...], (((1,), (0,)), ((), ())),
                        preferred_element_type=jnp.float32)
    h = h + p_ref[0:1, :]                # bias (fp32)

    # --- exact GELU (matches torch.nn.functional.gelu default) ---
    # (tanh-approx GELU would offload the transcendental to the EUP slot, but
    #  exact erf is kept to match the PyTorch reference bit-for-bit in fp32.)
    h = 0.5 * h * (1.0 + lax.erf(h * _INV_SQRT2))

    # --- LayerNorm over hidden dim, single reduction pass ---
    inv_h = 1.0 / h.shape[-1]
    s1 = jnp.sum(h, axis=-1, keepdims=True)
    s2 = jnp.sum(h * h, axis=-1, keepdims=True)
    mean = s1 * inv_h
    var = jnp.maximum(s2 * inv_h - mean * mean, 0.0)
    y = (h - mean) * lax.rsqrt(var + eps) * p_ref[1:2, :] + p_ref[2:3, :]

    o_ref[...] = y.astype(o_ref.dtype)


def bert_prediction_head_transform(x, weight, bias, gamma, beta, *,
                                   eps=1e-12, row_tile=1024,
                                   matmul_dtype=jnp.bfloat16):
    """x: [B, S, H_in]; weight: [H_out, H_in] (PyTorch nn.Linear layout).

    matmul_dtype: dtype of the MXU operands (None = keep native dtype; exact
    path). Accumulation and all GELU / LayerNorm math is fp32 regardless.
    """
    B, S, H_in = x.shape
    H_out, H_in_w = weight.shape
    assert H_in_w == H_in, "weight must be [hidden_out, hidden_in]"
    out_dtype = x.dtype
    M = B * S
    x2d = x.reshape(M, H_in)             # no wrapper-side cast (done in-kernel)

    # One-time XLA transpose (+ optional cast) of the PyTorch [out, in] weight.
    w = weight.astype(matmul_dtype) if matmul_dtype is not None else weight
    w = w.T                              # [H_in, H_out], row-major for the MXU

    # Single resident fp32 block: rows = (bias, gamma, beta).
    params = jnp.stack([bias, gamma, beta], axis=0).astype(jnp.float32)

    # Row-tile alignment: 16 when any sub-32-bit dtype is involved (bf16 packs
    # two rows per sublane), else 8.
    sub32 = any(jnp.dtype(d).itemsize < 4
                for d in (x2d.dtype, out_dtype, matmul_dtype or x2d.dtype))
    align = 16 if sub32 else 8

    vmem_limit = _vmem_limit_bytes()
    w_bytes = H_in * H_out * jnp.dtype(w.dtype).itemsize
    tm = max(align, min(_round_up(row_tile, align), _round_up(M, align)))
    tm = _cap_tm_for_vmem(tm, H_in, H_out,
                          jnp.dtype(x2d.dtype).itemsize,
                          jnp.dtype(out_dtype).itemsize,
                          w_bytes, align, vmem_limit)
    # Give v7x's two TensorCores at least 2 parallel grid steps when M is big
    # enough that splitting does not starve the MXU.
    if M > 512 and M <= tm:
        tm = max(256, _round_up((M + 1) // 2, align))
    grid = pl.cdiv(M, tm)                # ragged M handled by boundary masking

    kernel = functools.partial(_transform_kernel, eps=eps,
                               matmul_dtype=matmul_dtype)

    cost = pl.CostEstimate(
        flops=2 * M * H_in * H_out,
        transcendentals=M * H_out,
        bytes_accessed=(M * H_in * jnp.dtype(x2d.dtype).itemsize    # x in
                        + w_bytes                                   # weight
                        + 3 * H_out * 4                             # b/gamma/beta
                        + M * H_out * jnp.dtype(out_dtype).itemsize),  # out
    )

    def run(single_buffer_resident):
        if single_buffer_resident:
            # Constant index_map across the grid -> one buffer is enough.
            resident = lambda shape: pl.BlockSpec(
                shape, lambda i: (0, 0), pipeline_mode=pl.Buffered(1))
        else:
            resident = lambda shape: pl.BlockSpec(shape, lambda i: (0, 0))

        return pl.pallas_call(
            kernel,
            out_shape=jax.ShapeDtypeStruct((M, H_out), out_dtype),
            grid_spec=pltpu.PrefetchScalarGridSpec(
                num_scalar_prefetch=0,
                grid=(grid,),
                in_specs=[
                    pl.BlockSpec((tm, H_in), lambda i: (i, 0)),  # x rows (pipelined)
                    resident((H_in, H_out)),                     # weight (resident)
                    resident((3, H_out)),                        # bias/gamma/beta
                ],
                out_specs=pl.BlockSpec((tm, H_out), lambda i: (i, 0)),
            ),
            compiler_params=pltpu.CompilerParams(
                dimension_semantics=("parallel",),
                vmem_limit_bytes=vmem_limit,
            ),
            cost_estimate=cost,
        )(x2d, w, params)

    try:
        out2d = run(True)
    except Exception:
        # Fallback if single-buffered pipeline_mode is rejected by this
        # JAX/Mosaic version: default double-buffering (correct, more VMEM).
        out2d = run(False)

    return out2d.reshape(B, S, H_out)


def _reference(x, weight, bias, gamma, beta, eps=1e-12):
    h = jnp.einsum("bsh,oh->bso", x, weight) + bias
    h = 0.5 * h * (1.0 + lax.erf(h * _INV_SQRT2))
    mean = jnp.mean(h, axis=-1, keepdims=True)
    var = jnp.mean((h - mean) ** 2, axis=-1, keepdims=True)
    return (h - mean) * lax.rsqrt(var + eps) * gamma + beta


if __name__ == "__main__":
    key = jax.random.PRNGKey(0)
    B, S, H = 2, 8, 32          # batch=2, seq=8, hidden=32
    eps = 1e-12

    k_x, k_w, k_b, k_g, k_be = jax.random.split(key, 5)
    x = jax.random.normal(k_x, (B, S, H), dtype=jnp.float32)
    # nn.Linear(hidden, hidden): weight [out, in], bias [out]
    weight = jax.random.normal(k_w, (H, H), dtype=jnp.float32) * (1.0 / math.sqrt(H))
    bias = 0.02 * jax.random.normal(k_b, (H,), dtype=jnp.float32)
    # nn.LayerNorm(hidden) params, perturbed deterministically
    gamma = jnp.ones((H,), dtype=jnp.float32) + 0.01 * jax.random.normal(k_g, (H,))
    beta = 0.01 * jax.random.normal(k_be, (H,), dtype=jnp.float32)

    ref = _reference(x, weight, bias, gamma, beta, eps=eps)

    # fp32 MXU path: exact-match check. row_tile=8 gives a 2-step pipelined
    # grid even at this tiny size (M=16, tm=8).
    out_fp32 = bert_prediction_head_transform(
        x, weight, bias, gamma, beta, eps=eps, row_tile=8, matmul_dtype=None)
    out_fp32 = jax.block_until_ready(out_fp32)
    assert out_fp32.shape == (B, S, H)
    assert jnp.allclose(out_fp32, ref, atol=1e-4, rtol=1e-4), "fp32 mismatch"

    # bf16-operand MXU path (production default: bf16 MXU, fp32 accumulation,
    # cast done in-kernel).
    out_bf16 = bert_prediction_head_transform(
        x, weight, bias, gamma, beta, eps=eps, row_tile=16)
    out_bf16 = jax.block_until_ready(out_bf16)
    assert out_bf16.shape == (B, S, H)
    assert jnp.allclose(out_bf16, ref, atol=5e-2, rtol=5e-2), "bf16 mismatch"

    # Ragged M (no jnp.pad): M=10 with tm=8 -> partial boundary block masked
    # by Pallas, exact fp32 path.
    xr = x[:, :5, :]
    ref_r = _reference(xr, weight, bias, gamma, beta, eps=eps)
    out_r = bert_prediction_head_transform(
        xr, weight, bias, gamma, beta, eps=eps, row_tile=8, matmul_dtype=None)
    out_r = jax.block_until_ready(out_r)
    assert out_r.shape == xr.shape
    assert jnp.allclose(out_r, ref_r, atol=1e-4, rtol=1e-4), "ragged-M mismatch"

    print("KERNEL_OK")
</pallas_src>

<mosaic_0001>
module attributes {stable_mosaic.version = 11 : i64} {
  func.func @_transform_kernel(%arg0: i32, %arg1: memref<8x32xf32, #tpu.memory_space<vmem>>, %arg2: memref<32x32xf32, #tpu.memory_space<vmem>>, %arg3: memref<3x32xf32, #tpu.memory_space<vmem>>, %arg4: memref<8x32xf32, #tpu.memory_space<vmem>>) attributes {dimension_semantics = [#tpu.dimension_semantics<parallel>], iteration_bounds = array<i64: 2>, scalar_prefetch = 0 : i64, scratch_operands = 0 : i64, tpu.core_type = #tpu.core_type<tc>, window_params = [{transform_indices = @transform_0, window_bounds = array<i64: 8, 32>}, {pipeline_mode = #tpu.pipeline_mode<synchronous>, transform_indices = @transform_1, window_bounds = array<i64: 32, 32>}, {pipeline_mode = #tpu.pipeline_mode<synchronous>, transform_indices = @transform_2, window_bounds = array<i64: 3, 32>}, {transform_indices = @transform_3, window_bounds = array<i64: 8, 32>}]} {
    %c0 = arith.constant 0 : index
    %c0_0 = arith.constant 0 : index
    %0 = vector.load %arg1[%c0, %c0_0] : memref<8x32xf32, #tpu.memory_space<vmem>>, vector<8x32xf32>
    %c0_1 = arith.constant 0 : index
    %c0_2 = arith.constant 0 : index
    %1 = vector.load %arg2[%c0_1, %c0_2] : memref<32x32xf32, #tpu.memory_space<vmem>>, vector<32x32xf32>
    %cst = arith.constant dense<0.000000e+00> : vector<8x32xf32>
    %2 = tpu.matmul %0, %1, %cst {dimension_numbers = #tpu.dot_dimension_numbers<[1], [0], [0], [1], [0, 0, 1, 1], [], []>} : vector<8x32xf32>, vector<32x32xf32>, vector<8x32xf32> -> vector<8x32xf32>
    %c0_3 = arith.constant 0 : index
    %c0_4 = arith.constant 0 : index
    %3 = vector.load %arg3[%c0_3, %c0_4] : memref<3x32xf32, #tpu.memory_space<vmem>>, vector<1x32xf32>
    %4 = vector.broadcast %3 : vector<1x32xf32> to vector<8x32xf32>
    %5 = arith.addf %2, %4 : vector<8x32xf32>
    %cst_5 = arith.constant 5.000000e-01 : f32
    %6 = vector.broadcast %cst_5 : f32 to vector<8x32xf32>
    %7 = arith.mulf %6, %5 : vector<8x32xf32>
    %cst_6 = arith.constant 0.707106769 : f32
    %8 = vector.broadcast %cst_6 : f32 to vector<8x32xf32>
    %9 = arith.mulf %5, %8 : vector<8x32xf32>
    %10 = math.erf %9 : vector<8x32xf32>
    %cst_7 = arith.constant 1.000000e+00 : f32
    %11 = vector.broadcast %cst_7 : f32 to vector<8x32xf32>
    %12 = arith.addf %11, %10 : vector<8x32xf32>
    %13 = arith.mulf %7, %12 : vector<8x32xf32>
    %cst_8 = arith.constant dense<0.000000e+00> : vector<8xf32>
    %14 = vector.multi_reduction <add>, %13, %cst_8 [1] : vector<8x32xf32> to vector<8xf32>
    %15 = vector.shape_cast %14 : vector<8xf32> to vector<8x1xf32>
    %16 = arith.mulf %13, %13 : vector<8x32xf32>
    %cst_9 = arith.constant dense<0.000000e+00> : vector<8xf32>
    %17 = vector.multi_reduction <add>, %16, %cst_9 [1] : vector<8x32xf32> to vector<8xf32>
    %18 = vector.shape_cast %17 : vector<8xf32> to vector<8x1xf32>
    %cst_10 = arith.constant 3.125000e-02 : f32
    %19 = vector.broadcast %cst_10 : f32 to vector<8x1xf32>
    %20 = arith.mulf %15, %19 : vector<8x1xf32>
    %cst_11 = arith.constant 3.125000e-02 : f32
    %21 = vector.broadcast %cst_11 : f32 to vector<8x1xf32>
    %22 = arith.mulf %18, %21 : vector<8x1xf32>
    %23 = arith.mulf %20, %20 : vector<8x1xf32>
    %24 = arith.subf %22, %23 : vector<8x1xf32>
    %cst_12 = arith.constant 0.000000e+00 : f32
    %25 = vector.broadcast %cst_12 : f32 to vector<8x1xf32>
    %26 = arith.maximumf %24, %25 : vector<8x1xf32>
    %27 = vector.broadcast %20 : vector<8x1xf32> to vector<8x32xf32>
    %28 = arith.subf %13, %27 : vector<8x32xf32>
    %cst_13 = arith.constant 9.99999996E-13 : f32
    %29 = vector.broadcast %cst_13 : f32 to vector<8x1xf32>
    %30 = arith.addf %26, %29 : vector<8x1xf32>
    %31 = math.rsqrt %30 : vector<8x1xf32>
    %32 = vector.broadcast %31 : vector<8x1xf32> to vector<8x32xf32>
    %33 = arith.mulf %28, %32 : vector<8x32xf32>
    %c1 = arith.constant 1 : index
    %c0_14 = arith.constant 0 : index
    %34 = vector.load %arg3[%c1, %c0_14] : memref<3x32xf32, #tpu.memory_space<vmem>>, vector<1x32xf32>
    %35 = vector.broadcast %34 : vector<1x32xf32> to vector<8x32xf32>
    %36 = arith.mulf %33, %35 : vector<8x32xf32>
    %c2 = arith.constant 2 : index
    %c0_15 = arith.constant 0 : index
    %37 = vector.load %arg3[%c2, %c0_15] : memref<3x32xf32, #tpu.memory_space<vmem>>, vector<1x32xf32>
    %38 = vector.broadcast %37 : vector<1x32xf32> to vector<8x32xf32>
    %39 = arith.addf %36, %38 : vector<8x32xf32>
    %c0_16 = arith.constant 0 : index
    %c0_17 = arith.constant 0 : index
    %40 = vector.load %arg4[%c0_16, %c0_17] : memref<8x32xf32, #tpu.memory_space<vmem>>, vector<8x32xf32>
    tpu.vector_store %arg4[%c0_16, %c0_17], %39 {strides = array<i32>} : memref<8x32xf32, #tpu.memory_space<vmem>>, vector<8x32xf32>,
    return
  }
  func.func @transform_0(%arg0: i32) -> (i32, i32) {
    %c0_i32 = arith.constant 0 : i32
    %c0_i32_0 = arith.constant 0 : i32
    return %arg0, %c0_i32 : i32, i32
  }
  func.func @transform_1(%arg0: i32) -> (i32, i32) {
    %c0_i32 = arith.constant 0 : i32
    %c0_i32_0 = arith.constant 0 : i32
    %c0_i32_1 = arith.constant 0 : i32
    return %c0_i32, %c0_i32_0 : i32, i32
  }
  func.func @transform_2(%arg0: i32) -> (i32, i32) {
    %c0_i32 = arith.constant 0 : i32
    %c0_i32_0 = arith.constant 0 : i32
    %c0_i32_1 = arith.constant 0 : i32
    return %c0_i32, %c0_i32_0 : i32, i32
  }
  func.func @transform_3(%arg0: i32) -> (i32, i32) {
    %c0_i32 = arith.constant 0 : i32
    %c0_i32_0 = arith.constant 0 : i32
    return %arg0, %c0_i32 : i32, i32
  }
}

module attributes {stable_mosaic.version = 11 : i64} {
  func.func @_transform_kernel(%arg0: i32, %arg1: memref<8x32xf32, #tpu.memory_space<vmem>>, %arg2: memref<32x32xf32, #tpu.memory_space<vmem>>, %arg3: memref<3x32xf32, #tpu.memory_space<vmem>>, %arg4: memref<8x32xf32, #tpu.memory_space<vmem>>) attributes {dimension_semantics = [#tpu.dimension_semantics<parallel>], iteration_bounds = array<i64: 2>, scalar_prefetch = 0 : i64, scratch_operands = 0 : i64, tpu.core_type = #tpu.core_type<tc>, window_params = [{transform_indices = @transform_0, window_bounds = array<i64: 8, 32>}, {pipeline_mode = #tpu.pipeline_mode<synchronous>, transform_indices = @transform_1, window_bounds = array<i64: 32, 32>}, {pipeline_mode = #tpu.pipeline_mode<synchronous>, transform_indices = @transform_2, window_bounds = array<i64: 3, 32>}, {transform_indices = @transform_3, window_bounds = array<i64: 8, 32>}]} {
    %c0 = arith.constant 0 : index
    %c0_0 = arith.constant 0 : index
    %0 = vector.load %arg1[%c0, %c0_0] : memref<8x32xf32, #tpu.memory_space<vmem>>, vector<8x32xf32>
    %c0_1 = arith.constant 0 : index
    %c0_2 = arith.constant 0 : index
    %1 = vector.load %arg2[%c0_1, %c0_2] : memref<32x32xf32, #tpu.memory_space<vmem>>, vector<32x32xf32>
    %cst = arith.constant dense<0.000000e+00> : vector<8x32xf32>
    %2 = tpu.matmul %0, %1, %cst {dimension_numbers = #tpu.dot_dimension_numbers<[1], [0], [0], [1], [0, 0, 1, 1], [], []>} : vector<8x32xf32>, vector<32x32xf32>, vector<8x32xf32> -> vector<8x32xf32>
    %c0_3 = arith.constant 0 : index
    %c0_4 = arith.constant 0 : index
    %3 = vector.load %arg3[%c0_3, %c0_4] : memref<3x32xf32, #tpu.memory_space<vmem>>, vector<1x32xf32>
    %4 = vector.broadcast %3 : vector<1x32xf32> to vector<8x32xf32>
    %5 = arith.addf %2, %4 : vector<8x32xf32>
    %cst_5 = arith.constant 5.000000e-01 : f32
    %6 = vector.broadcast %cst_5 : f32 to vector<8x32xf32>
    %7 = arith.mulf %6, %5 : vector<8x32xf32>
    %cst_6 = arith.constant 0.707106769 : f32
    %8 = vector.broadcast %cst_6 : f32 to vector<8x32xf32>
    %9 = arith.mulf %5, %8 : vector<8x32xf32>
    %10 = math.erf %9 : vector<8x32xf32>
    %cst_7 = arith.constant 1.000000e+00 : f32
    %11 = vector.broadcast %cst_7 : f32 to vector<8x32xf32>
    %12 = arith.addf %11, %10 : vector<8x32xf32>
    %13 = arith.mulf %7, %12 : vector<8x32xf32>
    %cst_8 = arith.constant dense<0.000000e+00> : vector<8xf32>
    %14 = vector.multi_reduction <add>, %13, %cst_8 [1] : vector<8x32xf32> to vector<8xf32>
    %15 = vector.shape_cast %14 : vector<8xf32> to vector<8x1xf32>
    %16 = arith.mulf %13, %13 : vector<8x32xf32>
    %cst_9 = arith.constant dense<0.000000e+00> : vector<8xf32>
    %17 = vector.multi_reduction <add>, %16, %cst_9 [1] : vector<8x32xf32> to vector<8xf32>
    %18 = vector.shape_cast %17 : vector<8xf32> to vector<8x1xf32>
    %cst_10 = arith.constant 3.125000e-02 : f32
    %19 = vector.broadcast %cst_10 : f32 to vector<8x1xf32>
    %20 = arith.mulf %15, %19 : vector<8x1xf32>
    %cst_11 = arith.constant 3.125000e-02 : f32
    %21 = vector.broadcast %cst_11 : f32 to vector<8x1xf32>
    %22 = arith.mulf %18, %21 : vector<8x1xf32>
    %23 = arith.mulf %20, %20 : vector<8x1xf32>
    %24 = arith.subf %22, %23 : vector<8x1xf32>
    %cst_12 = arith.constant 0.000000e+00 : f32
    %25 = vector.broadcast %cst_12 : f32 to vector<8x1xf32>
    %26 = arith.maximumf %24, %25 : vector<8x1xf32>
    %27 = vector.broadcast %20 : vector<8x1xf32> to vector<8x32xf32>
    %28 = arith.subf %13, %27 : vector<8x32xf32>
    %cst_13 = arith.constant 9.99999996E-13 : f32
    %29 = vector.broadcast %cst_13 : f32 to vector<8x1xf32>
    %30 = arith.addf %26, %29 : vector<8x1xf32>
    %31 = math.rsqrt %30 : vector<8x1xf32>
    %32 = vector.broadcast %31 : vector<8x1xf32> to vector<8x32xf32>
    %33 = arith.mulf %28, %32 : vector<8x32xf32>
    %c1 = arith.constant 1 : index
    %c0_14 = arith.constant 0 : index
    %34 = vector.load %arg3[%c1, %c0_14] : memref<3x32xf32, #tpu.memory_space<vmem>>, vector<1x32xf32>
    %35 = vector.broadcast %34 : vector<1x32xf32> to vector<8x32xf32>
    %36 = arith.mulf %33, %35 : vector<8x32xf32>
    %c2 = arith.constant 2 : index
    %c0_15 = arith.constant 0 : index
    %37 = vector.load %arg3[%c2, %c0_15] : memref<3x32xf32, #tpu.memory_space<vmem>>, vector<1x32xf32>
    %38 = vector.broadcast %37 : vector<1x32xf32> to vector<8x32xf32>
    %39 = arith.addf %36, %38 : vector<8x32xf32>
    %c0_16 = arith.constant 0 : index
    %c0_17 = arith.constant 0 : index
    %40 = vector.load %arg4[%c0_16, %c0_17] : memref<8x32xf32, #tpu.memory_space<vmem>>, vector<8x32xf32>
    tpu.vector_store %arg4[%c0_16, %c0_17], %39 {strides = array<i32>} : memref<8x32xf32, #tpu.memory_space<vmem>>, vector<8x32xf32>,
    return
  }
  func.func @transform_0(%arg0: i32) -> (i32, i32) {
    %c0_i32 = arith.constant 0 : i32
    %c0_i32_0 = arith.constant 0 : i32
    return %arg0, %c0_i32 : i32, i32
  }
  func.func @transform_1(%arg0: i32) -> (i32, i32) {
    %c0_i32 = arith.constant 0 : i32
    %c0_i32_0 = arith.constant 0 : i32
    %c0_i32_1 = arith.constant 0 : i32
    return %c0_i32, %c0_i32_0 : i32, i32
  }
  func.func @transform_2(%arg0: i32) -> (i32, i32) {
    %c0_i32 = arith.constant 0 : i32
    %c0_i32_0 = arith.constant 0 : i32
    %c0_i32_1 = arith.constant 0 : i32
    return %c0_i32, %c0_i32_0 : i32, i32
  }
  func.func @transform_3(%arg0: i32) -> (i32, i32) {
    %c0_i32 = arith.constant 0 : i32
    %c0_i32_0 = arith.constant 0 : i32
    return %arg0, %c0_i32 : i32, i32
  }
}

</mosaic_0001>

<bundles_post_ra>
// kernel: tpu_custom_call.1
= control target key start
LH: loop header
LB: loop body
LE: loop exit
PB: predicated region body
PF: predicated region fallthrough
CT: control target
= control target key end

     0   :  { %8 = vsyncpa [#allocation3], 0  ;;  %s896_s0 = inlined_call_operand.hbm [shape: f32[16,32], index: 0, kind: input, shape index: {}]   ;;  %s897_s1 = inlined_call_operand.hbm [shape: f32[32,32], index: 1, kind: input, shape index: {}]   ;;  %s898_s2 = inlined_call_operand.hbm [shape: f32[3,32], index: 2, kind: input, shape index: {}]   ;;  %s899_s3 = inlined_call_operand.hbm [shape: f32[16,32], index: 3, kind: output, shape index: {}]  }
   0x1   :  { %10 = vsyncpa [#allocation3 + $0x1], 0 }
   0x2   :  { %11 = vsyncpa [#allocation6], 0 }
   0x3   :  { %12 = vsyncpa [#allocation4], 0 }
   0x4   :  { %14 = vsyncpa [#allocation4 + $0x1], 0  ;;  %s723_s12 = smov 0   ;;  %s725_s13 = smov 0  }
   0x5   :  { %s727_s14 = smov 0   ;;  %s729_s15 = smov 0  }
   0x6 LB: > { %s744_s16 = sadd.s32 4294967295, %s693_s15   ;;  %s434_s17 = sadd.s32 4294967294, %s693_s15   ;;  %s693_s15 = sphi %s729_s15, %s921_s15   ;;  %s689_s14 = sphi %s727_s14, %s920_s14   ;;  %s685_s13 = sphi %s725_s13, %s919_s13   ;;  %s681_s12 = sphi %s723_s12, %s918_s12  }
   0x7   : > { %p40_p0 = scmp.ne.s32.totalorder %s685_s13, %s681_s12  ;;  %p900_p1 = scmp.eq.s32.totalorder %s744_s16, 0 }
   0x8   : > { %p112_p3 = scmp.eq.s32.totalorder %s434_s17, 1  ;;  %p435_p5 = scmp.ge.s32.totalorder %s693_s15, 1 }
   0x9   : > { %p753_p4 = por %p900_p1, %p40_p0  ;;  %p119_p7 = scmp.lt.s32.totalorder %s693_s15, 3 }
   0xa   : > { %p758_p6 = por %p112_p3, %p40_p0  ;;  %s695_s21 = smov [#allocation5]  }
   0xb   : > { %s904_s18 = scalar_select %p753_p4, 1, 0 }
   0xc   : > { %s905_s19 = scalar_select %p758_p6, 1, 0 }
   0xd   : > { %p763_p8 = pnand %p435_p5, %p119_p7  ;;  %s131_s22 = sshll.u32 %s695_s21, 4  ;;  %s132_s22 = int_to_ptr.vmem [resolvable:$true] %s131_s22 }
   0xe   : > { %s696_s24 = smov [#allocation7]   ;;  %s556_s26 = scalar_lea.vmem %s132_s22, 512 }
   0xf   : > { %s906_s20 = scalar_select %p763_p8, 1, 0 }
  0x10   : > { %p482_p9 = pneg %p763_p8  ;;  %s145_s25 = sshll.u32 %s696_s24, 4  ;;  %s146_s25 = int_to_ptr.vmem [resolvable:$true] %s145_s25 }
  0x11   : > { %p557_p13 = scmp.ne.s32.totalorder %s132_s22, %s556_s26  ;;  %p564_p5 = scmp.lt.s32.totalorder %s132_s22, %s132_s22 }
  0x12   : > { %p772_p11 = pnand %p482_p9, %p900_p1  ;;  %p565_p7 = scmp.lt.s32.totalorder %s556_s26, %s556_s26 }
  0x14   : > { %p547_p12 = pneg %p772_p11  ;;  %p566_p10 = por %p565_p7, %p564_p5 }
  0x16   : > { %p559_p0 = pnand %p557_p13, %p547_p12 }
  0x18   : > { %p560_p3 = pneg %p559_p0 }
  0x1a   : > { %p567_p9 = pnand %p566_p10, %p560_p3 }
  0x1c   : > { %570 = shalt.err (!%p567_p9)
}
  0x1d   : > { %s697_s27 = smov 128   ;;  %s698_s28 = smov 8  }
  0x1e   : > { %485 = dma.hbm_to_vmem [thread:$0]  (!%p772_p11), %s897_s1, 512, %s132_s22, [#allocation6], %s697_s27, %s697_s27, %s698_s28  }
  0x1f   : > { %s582_s4 = scalar_lea.vmem %s146_s25, 64  ;;  %p590_p2 = scmp.lt.s32.totalorder %s146_s25, %s146_s25 }
  0x20   : > { %p583_p1 = scmp.ne.s32.totalorder %s146_s25, %s582_s4  ;;  %p591_p6 = scmp.lt.s32.totalorder %s582_s4, %s582_s4 }
  0x22   : > { %p585_p13 = pnand %p583_p1, %p547_p12  ;;  %p592_p5 = por %p591_p6, %p590_p2 }
  0x24   : > { %p586_p0 = pneg %p585_p13 }
  0x26   : > { %p593_p10 = pnand %p592_p5, %p586_p0 }
  0x28   : > { %596 = shalt.err (!%p593_p10)
}
  0x29   : > { %488 = dma.hbm_to_vmem [thread:$0]  (!%p772_p11), %s898_s2, 64, %s146_s25, [#allocation6]  }
  0x2a   : > { %s795_s7 = sadd.s32 1, %s693_s15   ;;  %s27_s8 = sadd.s32 1, %s689_s14 }
  0x2b   : > { %s24_s9 = ssub.s32 %s693_s15, %s795_s7  ;;  %p34_p1 = scmp.ne.s32.totalorder %s689_s14, %s685_s13 }
  0x2c   : > { %p25_p2 = scmp.eq.s32.totalorder %s24_s9, 0  ;;  %p35_p6 = scmp.eq.s32.totalorder %s693_s15, 0 }
  0x2d   : > { %p908_p12 = scmp.eq.s32.totalorder %s744_s16, 1  ;;  %p499_p7 = scmp.lt.s32.totalorder %s693_s15, 2 }
  0x2e   : > { %s811_s11 = scalar_select %p25_p2, %s689_s14, %s27_s8  }
  0x2f   : > { %p805_p3 = por %p908_p12, %p34_p1  ;;  %p36_p9 = por %p35_p6, %p34_p1 }
  0x30   : > { %s156_s17 = sand.u32 1, %s689_s14   ;;  %s440_s22 = sshll.u32 %s693_s15, 7 }
  0x31   : > { %s909_s10 = scalar_select %p805_p3, 1, 0 }
  0x32   : > { %s439_s21 = sshll.u32 %s156_s17, 3  ;;  %s818_s25 = scalar_lea.hbm %s896_s0, %s440_s22 }
  0x33   : > { %s160_s26 = scalar_lea.vmem [#allocation2], %s439_s21  ;;  %p820_p11 = pnand %p499_p7, %p36_p9 }
  0x34   : > { %s167_s27 = sshll.u32 %s160_s26, 4  ;;  %s157_s29 = scalar_lea.sflag [#allocation3], %s156_s17  ;;  %s168_s27 = int_to_ptr.vmem [resolvable:$true] %s167_s27 }
  0x35   : > { %s597_s30 = scalar_lea.hbm %s818_s25, 128  ;;  %p599_p0 = pneg %p820_p11 }
  0x36   : > { %p598_p13 = scmp.ne.s32.totalorder %s818_s25, %s597_s30  ;;  %s602_s6 = scalar_lea.hbm %s896_s0, 256 }
  0x37   : > { %p603_p1 = scmp.lt.s32.totalorder %s818_s25, %s896_s0  ;;  %p604_p2 = scmp.lt.s32.totalorder %s602_s6, %s597_s30 }
  0x38   : > { %p600_p5 = pnand %p599_p0, %p598_p13 }
  0x39   : > { %p605_p6 = por %p604_p2, %p603_p1 }
  0x3a   : > { %p601_p10 = pneg %p600_p5 }
  0x3c   : > { %p606_p12 = pnand %p605_p6, %p601_p10 }
  0x3e   : > { %609 = shalt.err (!%p606_p12)
}
  0x3f   : > { %s610_s21 = scalar_lea.vmem %s168_s27, 128  ;;  %s699_s17 = smov [#allocation2]  }
  0x40   : > { %p611_p7 = scmp.ne.s32.totalorder %s168_s27, %s610_s21  ;;  %s615_s22 = sshll.u32 %s699_s17, 4  ;;  %s616_s22 = int_to_ptr.vmem [resolvable:$false] %s615_s22 }
  0x41   : > { %s617_s23 = scalar_lea.vmem %s616_s22, 256  ;;  %p618_p13 = scmp.lt.s32.totalorder %s168_s27, %s616_s22 }
  0x42   : > { %p613_p9 = pnand %p611_p7, %p599_p0  ;;  %p619_p5 = scmp.lt.s32.totalorder %s617_s23, %s610_s21 }
  0x44   : > { %p614_p3 = pneg %p613_p9  ;;  %p620_p4 = por %p619_p5, %p618_p13 }
  0x46   : > { %p621_p8 = pnand %p620_p4, %p614_p3 }
  0x48   : > { %624 = shalt.err (!%p621_p8)
}
  0x49   : > { %492 = dma.hbm_to_vmem [thread:$0]  (!%p820_p11), %s818_s25, 128, %s168_s27, %s157_s29  }
  0x4a   : > { %p911_p10 = scmp.ne.s32.totalorder %s906_s20, 0 }
  0x4b   : > { %s841_s24 = sand.u32 (!%p911_p10), 1, %s685_s13   ;;  %p912_p4 = scmp.ne.s32.totalorder (!%p911_p10), %s904_s18, 0 }
  0x4c   : > { %176 = sbr.rel (%p911_p10) target bundleno = 493 (0x1ed), region = 32  ;;  %s442_s26 = sshll.u32 (!%p911_p10), %s841_s24, 3 }
  0x4d   : > { %s179_s30 = scalar_lea.sflag (!%p911_p10), [#allocation3], %s841_s24  ;;  %s182_s4 = scalar_lea.vmem (!%p911_p10), [#allocation2], %s442_s26 }
  0x51   : > { %668 = dma.done.wait (%p912_p4), %s179_s30, 128  }
  0x52   : > { %670 = vsyncadd (%p912_p4), %s179_s30, 4294967168  ;;  %p913_p8 = scmp.eq.s32.totalorder %s744_s16, 0 }
  0x54   : > { %672 = dma.done.wait (%p913_p8), [#allocation6], 576   ;;  %p914_p3 = pmov %p913_p8 }
  0x55   : > { %v700_v0 = vmov 0.0   ;;  %vm701_vm0 = vmmov 0   ;;  %v217_v1 = vld [vmem:[#allocation5 + $0x18] sm:$0xff]  ;;  %v216_v2 = vld [vmem:[#allocation5 + $0x10] sm:$0xff]  ;;  %v215_v3 = vld [vmem:[#allocation5 + $0x8] sm:$0xff]  ;;  %vm223_vm1 = vcmask 261120  }
  0x56   : > { %674 = vsyncadd (%p914_p3), [#allocation6], 4294966720  ;;  %459 = vmatprep.subr.mxu0 %v700_v0  ;;  %467 = vmatprep.mubr.msk.f32.mxu0 %vm701_vm0, %v700_v0  ;;  %v214_v4 = vld [vmem:[#allocation5] sm:$0xff]  ;;  %v213_v5 = vld [vmem:[%s182_s4] sm:$0xff]  ;;  %s451_s18 = sshll.u32 %s744_s16, 7  ;;  %s212_s20 = scalar_lea.vmem [#allocation8], %s442_s26 }
  0x57   : > { %460 = vmatpush3.msra.mxu0 %v217_v1  ;;  %v446_v6 = vld [vmem:[#allocation7] ss:$0 sm:$0xff]  ;;  %v448_v28 = vld [vmem:[#allocation7 + $0x1] ss:$0 sm:$0xff]  ;;  %v449_v30 = vld [vmem:[#allocation7 + $0x2] ss:$0 sm:$0xff]  ;;  %s343_s29 = scalar_lea.hbm %s899_s3, %s451_s18 }
  0x58   : > { %461 = vmatprep.subr.mxu0 %v700_v0  ;;  %s345_s25 = sshll.u32 %s212_s20, 4  ;;  %s332_s5 = scalar_lea.sflag [#allocation4], %s841_s24  ;;  %s346_s25 = int_to_ptr.vmem [resolvable:$true] %s345_s25 }
  0x59   : > { %462 = vmatpush3.msra.mxu0 %v216_v2  ;;  %s625_s6 = scalar_lea.vmem %s346_s25, 128  ;;  %p915_p0 = scmp.ne.s32.totalorder %s909_s10, 0 }
  0x5a   : > { %463 = vmatprep.subr.mxu0 %v700_v0  ;;  %p626_p11 = scmp.ne.s32.totalorder %s346_s25, %s625_s6  ;;  %s702_s8 = smov [#allocation8]  }
  0x5b   : > { %464 = vmatpush3.msra.mxu0 %v215_v3  ;;  %s629_s16 = sshll.u32 %s702_s8, 4  ;;  %s630_s16 = int_to_ptr.vmem [resolvable:$false] %s629_s16 }
  0x5c   : > { %465 = vmatprep.subr.mxu0 %v700_v0  ;;  %p627_p1 = pnand %p626_p11, %p915_p0  ;;  %s631_s9 = scalar_lea.vmem %s630_s16, 256 }
  0x5d   : > { %466 = vmatpush3.msra.mxu0 %v214_v4  ;;  %p632_p6 = scmp.lt.s32.totalorder %s346_s25, %s630_s16  ;;  %p633_p12 = scmp.lt.s32.totalorder %s631_s9, %s625_s6 }
  0x5e   : > { %468 = vmatmul.mubr.msk.f32.vlgmr.msra.gmra.mxu0 %vm223_vm1, %v213_v5  ;;  %p628_p2 = pneg %p627_p1 }
  0x5f   : > { %p634_p7 = por %p633_p12, %p632_p6 }
  0x61   : > { %p635_p9 = pnand %p634_p7, %p628_p2 }
 0x11e   : > { %v293_v7 = vpop.f32.mrf.mxu0 }
 0x11f   : > { %v294_v8 = vadd.f32 %v446_v6, %v293_v7 }
 0x120   : > { %v469_v9 = vpop.f32.mrf.mxu0 }
 0x121   : > { %v298_v10 = vmul.f32 0.70710677, %v294_v8  ;;  %v297_v12 = vmul.f32 0.5, %v294_v8 }
 0x123   : > { %541 = verf.f32 %v298_v10 }
 0x130   : > { %v542_v11 = vpop.eup %541 }
 0x131   : > { %v300_v13 = vadd.f32 1.0, %v542_v11 }
 0x133   : > { %v301_v14 = vmul.f32 %v300_v13, %v297_v12 }
 0x135   : > { %v302_v15 = vsel %vm223_vm1, %v301_v14, 0.0  ;;  %v305_v16 = vmul.f32 %v301_v14, %v301_v14 }
 0x136   : > { %303 = vadd.xlane.f32.xlu0 %v302_v15 }
 0x137   : > { %v306_v17 = vsel %vm223_vm1, %v305_v16, 0.0 }
 0x13a   : > { %307 = vadd.xlane.f32.xlu0 %v306_v17 }
 0x1bf   : > { %v304_v18 = vpop.xlane.xlu0 %303 }
 0x1c0   : > { %v309_v19 = vmul.f32 0.03125, %v304_v18 }
 0x1c2   : > { %v311_v21 = vmul.f32 %v309_v19, %v309_v19  ;;  %v314_v26 = vsub.f32 %v301_v14, %v309_v19 }
 0x1c3   : > { %v308_v20 = vpop.xlane.xlu0 %307 }
 0x1c4   : > { %v310_v22 = vmul.f32 0.03125, %v308_v20 }
 0x1c6   : > { %v312_v23 = vsub.f32 %v310_v22, %v311_v21 }
 0x1c8   : > { %v313_v24 = vmax.f32 %v312_v23, 0.0 }
 0x1ca   : > { %v315_v25 = vadd.f32 1e-12, %v313_v24 }
 0x1cc   : > { %543 = vrsqrt.f32 %v315_v25 }
 0x1d9   : > { %v544_v27 = vpop.eup %543 }
 0x1da   : > { %v317_v29 = vmul.f32 %v544_v27, %v314_v26 }
 0x1dc   : > { %v323_v31 = vmul.f32 %v448_v28, %v317_v29 }
 0x1de   : > { %v329_v32 = vadd.f32 %v449_v30, %v323_v31 }
 0x1e0   : > { %330 = vst.msk [vmem:[%s212_s20] sm:$0xff] %vm223_vm1, %v329_v32 }
 0x1e1   : > { %638 = shalt.err (!%p635_p9)
}
 0x1e2   : > { %s639_s21 = scalar_lea.hbm %s343_s29, 128  ;;  %s643_s23 = scalar_lea.hbm %s899_s3, 256 }
 0x1e3   : > { %p640_p13 = scmp.ne.s32.totalorder %s343_s29, %s639_s21  ;;  %p644_p4 = scmp.lt.s32.totalorder %s343_s29, %s899_s3 }
 0x1e4   : > { %p645_p8 = scmp.lt.s32.totalorder %s643_s23, %s639_s21 }
 0x1e5   : > { %p641_p5 = pnand %p640_p13, %p915_p0 }
 0x1e6   : > { %p646_p3 = por %p645_p8, %p644_p4 }
 0x1e7   : > { %p642_p10 = pneg %p641_p5 }
 0x1e9   : > { %p647_p11 = pnand %p646_p3, %p642_p10 }
 0x1eb   : > { %650 = shalt.err (!%p647_p11)
}
 0x1ec   : > { %480 = dma.vmem_to_hbm [thread:$0]  (%p915_p0), %s346_s25, 128, %s343_s29, %s332_s5  }
 0x1ed PF: > { %s357_s30 = sand.u32 1, %s681_s12   ;;  %p916_p1 = scmp.ne.s32.totalorder %s905_s19, 0 }
 0x1ee   : > { %p917_p2 = scmp.ge.s32.totalorder %s693_s15, 2  ;;  %s358_s4 = scalar_lea.sflag [#allocation4], %s357_s30 }
 0x1f0   : > { %p494_p6 = pnand %p917_p2, %p916_p1 }
 0x1f2   : > { %p495_p12 = pneg %p494_p6 }
 0x1f4   : > { %676 = dma.done.wait (%p495_p12), %s358_s4, 128  }
 0x1f5   : > { %678 = vsyncadd (%p495_p12), %s358_s4, 4294967168  ;;  %p17_p7 = scmp.ge.s32.totalorder %s795_s7, 4   ;;  %s918_s12 = smov %s685_s13 }
 0x1f6   : > { %s919_s13 = smov %s689_s14  ;;  %s920_s14 = smov %s811_s11 }
 0x1f7   : > { %s921_s15 = smov %s795_s7  ;;  %19 = sbr.rel (!%p17_p7) target bundleno = 6 (0x6), region = 85 }
 0x1fc   :  { %363 = vsyncpa [#allocation3], 1 }
 0x1fd   :  { %365 = vsyncpa [#allocation3 + $0x1], 1 }
 0x1fe   :  { %366 = vsyncpa [#allocation6], 1 }
 0x1ff   :  { %367 = vsyncpa [#allocation4], 1 }
 0x200   :  { %369 = vsyncpa [#allocation4 + $0x1], 1 }

// kernel: tpu_custom_call.1
= control target key start
LH: loop header
LB: loop body
LE: loop exit
PB: predicated region body
PF: predicated region fallthrough
CT: control target
= control target key end

     0   :  { %8 = vsyncpa [#allocation3], 0  ;;  %s896_s0 = inlined_call_operand.hbm [shape: f32[16,32], index: 0, kind: input, shape index: {}]   ;;  %s897_s1 = inlined_call_operand.hbm [shape: f32[32,32], index: 1, kind: input, shape index: {}]   ;;  %s898_s2 = inlined_call_operand.hbm [shape: f32[3,32], index: 2, kind: input, shape index: {}]   ;;  %s899_s3 = inlined_call_operand.hbm [shape: f32[16,32], index: 3, kind: output, shape index: {}]  }
   0x1   :  { %10 = vsyncpa [#allocation3 + $0x1], 0 }
   0x2   :  { %11 = vsyncpa [#allocation6], 0 }
   0x3   :  { %12 = vsyncpa [#allocation4], 0 }
   0x4   :  { %14 = vsyncpa [#allocation4 + $0x1], 0  ;;  %s723_s12 = smov 0   ;;  %s725_s13 = smov 0  }
   0x5   :  { %s727_s14 = smov 0   ;;  %s729_s15 = smov 0  }
   0x6 LB: > { %s744_s16 = sadd.s32 4294967295, %s693_s15   ;;  %s434_s17 = sadd.s32 4294967294, %s693_s15   ;;  %s693_s15 = sphi %s729_s15, %s921_s15   ;;  %s689_s14 = sphi %s727_s14, %s920_s14   ;;  %s685_s13 = sphi %s725_s13, %s919_s13   ;;  %s681_s12 = sphi %s723_s12, %s918_s12  }
   0x7   : > { %p40_p0 = scmp.ne.s32.totalorder %s685_s13, %s681_s12  ;;  %p900_p1 = scmp.eq.s32.totalorder %s744_s16, 0 }
   0x8   : > { %p112_p3 = scmp.eq.s32.totalorder %s434_s17, 1  ;;  %p435_p5 = scmp.ge.s32.totalorder %s693_s15, 1 }
   0x9   : > { %p753_p4 = por %p900_p1, %p40_p0  ;;  %p119_p7 = scmp.lt.s32.totalorder %s693_s15, 3 }
   0xa   : > { %p758_p6 = por %p112_p3, %p40_p0  ;;  %s695_s21 = smov [#allocation5]  }
   0xb   : > { %s904_s18 = scalar_select %p753_p4, 1, 0 }
   0xc   : > { %s905_s19 = scalar_select %p758_p6, 1, 0 }
   0xd   : > { %p763_p8 = pnand %p435_p5, %p119_p7  ;;  %s131_s22 = sshll.u32 %s695_s21, 4  ;;  %s132_s22 = int_to_ptr.vmem [resolvable:$true] %s131_s22 }
   0xe   : > { %s696_s24 = smov [#allocation7]   ;;  %s556_s26 = scalar_lea.vmem %s132_s22, 512 }
   0xf   : > { %s906_s20 = scalar_select %p763_p8, 1, 0 }
  0x10   : > { %p482_p9 = pneg %p763_p8  ;;  %s145_s25 = sshll.u32 %s696_s24, 4  ;;  %s146_s25 = int_to_ptr.vmem [resolvable:$true] %s145_s25 }
  0x11   : > { %p557_p13 = scmp.ne.s32.totalorder %s132_s22, %s556_s26  ;;  %p564_p5 = scmp.lt.s32.totalorder %s132_s22, %s132_s22 }
  0x12   : > { %p772_p11 = pnand %p482_p9, %p900_p1  ;;  %p565_p7 = scmp.lt.s32.totalorder %s556_s26, %s556_s26 }
  0x14   : > { %p547_p12 = pneg %p772_p11  ;;  %p566_p10 = por %p565_p7, %p564_p5 }
  0x16   : > { %p559_p0 = pnand %p557_p13, %p547_p12 }
  0x18   : > { %p560_p3 = pneg %p559_p0 }
  0x1a   : > { %p567_p9 = pnand %p566_p10, %p560_p3 }
  0x1c   : > { %570 = shalt.err (!%p567_p9)
}
  0x1d   : > { %s697_s27 = smov 128   ;;  %s698_s28 = smov 8  }
  0x1e   : > { %485 = dma.hbm_to_vmem [thread:$0]  (!%p772_p11), %s897_s1, 512, %s132_s22, [#allocation6], %s697_s27, %s697_s27, %s698_s28  }
  0x1f   : > { %s582_s4 = scalar_lea.vmem %s146_s25, 64  ;;  %p590_p2 = scmp.lt.s32.totalorder %s146_s25, %s146_s25 }
  0x20   : > { %p583_p1 = scmp.ne.s32.totalorder %s146_s25, %s582_s4  ;;  %p591_p6 = scmp.lt.s32.totalorder %s582_s4, %s582_s4 }
  0x22   : > { %p585_p13 = pnand %p583_p1, %p547_p12  ;;  %p592_p5 = por %p591_p6, %p590_p2 }
  0x24   : > { %p586_p0 = pneg %p585_p13 }
  0x26   : > { %p593_p10 = pnand %p592_p5, %p586_p0 }
  0x28   : > { %596 = shalt.err (!%p593_p10)
}
  0x29   : > { %488 = dma.hbm_to_vmem [thread:$0]  (!%p772_p11), %s898_s2, 64, %s146_s25, [#allocation6]  }
  0x2a   : > { %s795_s7 = sadd.s32 1, %s693_s15   ;;  %s27_s8 = sadd.s32 1, %s689_s14 }
  0x2b   : > { %s24_s9 = ssub.s32 %s693_s15, %s795_s7  ;;  %p34_p1 = scmp.ne.s32.totalorder %s689_s14, %s685_s13 }
  0x2c   : > { %p25_p2 = scmp.eq.s32.totalorder %s24_s9, 0  ;;  %p35_p6 = scmp.eq.s32.totalorder %s693_s15, 0 }
  0x2d   : > { %p908_p12 = scmp.eq.s32.totalorder %s744_s16, 1  ;;  %p499_p7 = scmp.lt.s32.totalorder %s693_s15, 2 }
  0x2e   : > { %s811_s11 = scalar_select %p25_p2, %s689_s14, %s27_s8  }
  0x2f   : > { %p805_p3 = por %p908_p12, %p34_p1  ;;  %p36_p9 = por %p35_p6, %p34_p1 }
  0x30   : > { %s156_s17 = sand.u32 1, %s689_s14   ;;  %s440_s22 = sshll.u32 %s693_s15, 7 }
  0x31   : > { %s909_s10 = scalar_select %p805_p3, 1, 0 }
  0x32   : > { %s439_s21 = sshll.u32 %s156_s17, 3  ;;  %s818_s25 = scalar_lea.hbm %s896_s0, %s440_s22 }
  0x33   : > { %s160_s26 = scalar_lea.vmem [#allocation2], %s439_s21  ;;  %p820_p11 = pnand %p499_p7, %p36_p9 }
  0x34   : > { %s167_s27 = sshll.u32 %s160_s26, 4  ;;  %s157_s29 = scalar_lea.sflag [#allocation3], %s156_s17  ;;  %s168_s27 = int_to_ptr.vmem [resolvable:$true] %s167_s27 }
  0x35   : > { %s597_s30 = scalar_lea.hbm %s818_s25, 128  ;;  %p599_p0 = pneg %p820_p11 }
  0x36   : > { %p598_p13 = scmp.ne.s32.totalorder %s818_s25, %s597_s30  ;;  %s602_s6 = scalar_lea.hbm %s896_s0, 256 }
  0x37   : > { %p603_p1 = scmp.lt.s32.totalorder %s818_s25, %s896_s0  ;;  %p604_p2 = scmp.lt.s32.totalorder %s602_s6, %s597_s30 }
  0x38   : > { %p600_p5 = pnand %p599_p0, %p598_p13 }
  0x39   : > { %p605_p6 = por %p604_p2, %p603_p1 }
  0x3a   : > { %p601_p10 = pneg %p600_p5 }
  0x3c   : > { %p606_p12 = pnand %p605_p6, %p601_p10 }
  0x3e   : > { %609 = shalt.err (!%p606_p12)
}
  0x3f   : > { %s610_s21 = scalar_lea.vmem %s168_s27, 128  ;;  %s699_s17 = smov [#allocation2]  }
  0x40   : > { %p611_p7 = scmp.ne.s32.totalorder %s168_s27, %s610_s21  ;;  %s615_s22 = sshll.u32 %s699_s17, 4  ;;  %s616_s22 = int_to_ptr.vmem [resolvable:$false] %s615_s22 }
  0x41   : > { %s617_s23 = scalar_lea.vmem %s616_s22, 256  ;;  %p618_p13 = scmp.lt.s32.totalorder %s168_s27, %s616_s22 }
  0x42   : > { %p613_p9 = pnand %p611_p7, %p599_p0  ;;  %p619_p5 = scmp.lt.s32.totalorder %s617_s23, %s610_s21 }
  0x44   : > { %p614_p3 = pneg %p613_p9  ;;  %p620_p4 = por %p619_p5, %p618_p13 }
  0x46   : > { %p621_p8 = pnand %p620_p4, %p614_p3 }
  0x48   : > { %624 = shalt.err (!%p621_p8)
}
  0x49   : > { %492 = dma.hbm_to_vmem [thread:$0]  (!%p820_p11), %s818_s25, 128, %s168_s27, %s157_s29  }
  0x4a   : > { %p911_p10 = scmp.ne.s32.totalorder %s906_s20, 0 }
  0x4b   : > { %s841_s24 = sand.u32 (!%p911_p10), 1, %s685_s13   ;;  %p912_p4 = scmp.ne.s32.totalorder (!%p911_p10), %s904_s18, 0 }
  0x4c   : > { %176 = sbr.rel (%p911_p10) target bundleno = 493 (0x1ed), region = 32  ;;  %s442_s26 = sshll.u32 (!%p911_p10), %s841_s24, 3 }
  0x4d   : > { %s179_s30 = scalar_lea.sflag (!%p911_p10), [#allocation3], %s841_s24  ;;  %s182_s4 = scalar_lea.vmem (!%p911_p10), [#allocation2], %s442_s26 }
  0x51   : > { %668 = dma.done.wait (%p912_p4), %s179_s30, 128  }
  0x52   : > { %670 = vsyncadd (%p912_p4), %s179_s30, 4294967168  ;;  %p913_p8 = scmp.eq.s32.totalorder %s744_s16, 0 }
  0x54   : > { %672 = dma.done.wait (%p913_p8), [#allocation6], 576   ;;  %p914_p3 = pmov %p913_p8 }
  0x55   : > { %v700_v0 = vmov 0.0   ;;  %vm701_vm0 = vmmov 0   ;;  %v217_v1 = vld [vmem:[#allocation5 + $0x18] sm:$0xff]  ;;  %v216_v2 = vld [vmem:[#allocation5 + $0x10] sm:$0xff]  ;;  %v215_v3 = vld [vmem:[#allocation5 + $0x8] sm:$0xff]  ;;  %vm223_vm1 = vcmask 261120  }
  0x56   : > { %674 = vsyncadd (%p914_p3), [#allocation6], 4294966720  ;;  %459 = vmatprep.subr.mxu0 %v700_v0  ;;  %467 = vmatprep.mubr.msk.f32.mxu0 %vm701_vm0, %v700_v0  ;;  %v214_v4 = vld [vmem:[#allocation5] sm:$0xff]  ;;  %v213_v5 = vld [vmem:[%s182_s4] sm:$0xff]  ;;  %s451_s18 = sshll.u32 %s744_s16, 7  ;;  %s212_s20 = scalar_lea.vmem [#allocation8], %s442_s26 }
  0x57   : > { %460 = vmatpush3.msra.mxu0 %v217_v1  ;;  %v446_v6 = vld [vmem:[#allocation7] ss:$0 sm:$0xff]  ;;  %v448_v28 = vld [vmem:[#allocation7 + $0x1] ss:$0 sm:$0xff]  ;;  %v449_v30 = vld [vmem:[#allocation7 + $0x2] ss:$0 sm:$0xff]  ;;  %s343_s29 = scalar_lea.hbm %s899_s3, %s451_s18 }
  0x58   : > { %461 = vmatprep.subr.mxu0 %v700_v0  ;;  %s345_s25 = sshll.u32 %s212_s20, 4  ;;  %s332_s5 = scalar_lea.sflag [#allocation4], %s841_s24  ;;  %s346_s25 = int_to_ptr.vmem [resolvable:$true] %s345_s25 }
  0x59   : > { %462 = vmatpush3.msra.mxu0 %v216_v2  ;;  %s625_s6 = scalar_lea.vmem %s346_s25, 128  ;;  %p915_p0 = scmp.ne.s32.totalorder %s909_s10, 0 }
  0x5a   : > { %463 = vmatprep.subr.mxu0 %v700_v0  ;;  %p626_p11 = scmp.ne.s32.totalorder %s346_s25, %s625_s6  ;;  %s702_s8 = smov [#allocation8]  }
  0x5b   : > { %464 = vmatpush3.msra.mxu0 %v215_v3  ;;  %s629_s16 = sshll.u32 %s702_s8, 4  ;;  %s630_s16 = int_to_ptr.vmem [resolvable:$false] %s629_s16 }
  0x5c   : > { %465 = vmatprep.subr.mxu0 %v700_v0  ;;  %p627_p1 = pnand %p626_p11, %p915_p0  ;;  %s631_s9 = scalar_lea.vmem %s630_s16, 256 }
  0x5d   : > { %466 = vmatpush3.msra.mxu0 %v214_v4  ;;  %p632_p6 = scmp.lt.s32.totalorder %s346_s25, %s630_s16  ;;  %p633_p12 = scmp.lt.s32.totalorder %s631_s9, %s625_s6 }
  0x5e   : > { %468 = vmatmul.mubr.msk.f32.vlgmr.msra.gmra.mxu0 %vm223_vm1, %v213_v5  ;;  %p628_p2 = pneg %p627_p1 }
  0x5f   : > { %p634_p7 = por %p633_p12, %p632_p6 }
  0x61   : > { %p635_p9 = pnand %p634_p7, %p628_p2 }
 0x11e   : > { %v293_v7 = vpop.f32.mrf.mxu0 }
 0x11f   : > { %v294_v8 = vadd.f32 %v446_v6, %v293_v7 }
 0x120   : > { %v469_v9 = vpop.f32.mrf.mxu0 }
 0x121   : > { %v298_v10 = vmul.f32 0.70710677, %v294_v8  ;;  %v297_v12 = vmul.f32 0.5, %v294_v8 }
 0x123   : > { %541 = verf.f32 %v298_v10 }
 0x130   : > { %v542_v11 = vpop.eup %541 }
 0x131   : > { %v300_v13 = vadd.f32 1.0, %v542_v11 }
 0x133   : > { %v301_v14 = vmul.f32 %v300_v13, %v297_v12 }
 0x135   : > { %v302_v15 = vsel %vm223_vm1, %v301_v14, 0.0  ;;  %v305_v16 = vmul.f32 %v301_v14, %v301_v14 }
 0x136   : > { %303 = vadd.xlane.f32.xlu0 %v302_v15 }
 0x137   : > { %v306_v17 = vsel %vm223_vm1, %v305_v16, 0.0 }
 0x13a   : > { %307 = vadd.xlane.f32.xlu0 %v306_v17 }
 0x1bf   : > { %v304_v18 = vpop.xlane.xlu0 %303 }
 0x1c0   : > { %v309_v19 = vmul.f32 0.03125, %v304_v18 }
 0x1c2   : > { %v311_v21 = vmul.f32 %v309_v19, %v309_v19  ;;  %v314_v26 = vsub.f32 %v301_v14, %v309_v19 }
 0x1c3   : > { %v308_v20 = vpop.xlane.xlu0 %307 }
 0x1c4   : > { %v310_v22 = vmul.f32 0.03125, %v308_v20 }
 0x1c6   : > { %v312_v23 = vsub.f32 %v310_v22, %v311_v21 }
 0x1c8   : > { %v313_v24 = vmax.f32 %v312_v23, 0.0 }
 0x1ca   : > { %v315_v25 = vadd.f32 1e-12, %v313_v24 }
 0x1cc   : > { %543 = vrsqrt.f32 %v315_v25 }
 0x1d9   : > { %v544_v27 = vpop.eup %543 }
 0x1da   : > { %v317_v29 = vmul.f32 %v544_v27, %v314_v26 }
 0x1dc   : > { %v323_v31 = vmul.f32 %v448_v28, %v317_v29 }
 0x1de   : > { %v329_v32 = vadd.f32 %v449_v30, %v323_v31 }
 0x1e0   : > { %330 = vst.msk [vmem:[%s212_s20] sm:$0xff] %vm223_vm1, %v329_v32 }
 0x1e1   : > { %638 = shalt.err (!%p635_p9)
}
 0x1e2   : > { %s639_s21 = scalar_lea.hbm %s343_s29, 128  ;;  %s643_s23 = scalar_lea.hbm %s899_s3, 256 }
 0x1e3   : > { %p640_p13 = scmp.ne.s32.totalorder %s343_s29, %s639_s21  ;;  %p644_p4 = scmp.lt.s32.totalorder %s343_s29, %s899_s3 }
 0x1e4   : > { %p645_p8 = scmp.lt.s32.totalorder %s643_s23, %s639_s21 }
 0x1e5   : > { %p641_p5 = pnand %p640_p13, %p915_p0 }
 0x1e6   : > { %p646_p3 = por %p645_p8, %p644_p4 }
 0x1e7   : > { %p642_p10 = pneg %p641_p5 }
 0x1e9   : > { %p647_p11 = pnand %p646_p3, %p642_p10 }
 0x1eb   : > { %650 = shalt.err (!%p647_p11)
}
 0x1ec   : > { %480 = dma.vmem_to_hbm [thread:$0]  (%p915_p0), %s346_s25, 128, %s343_s29, %s332_s5  }
 0x1ed PF: > { %s357_s30 = sand.u32 1, %s681_s12   ;;  %p916_p1 = scmp.ne.s32.totalorder %s905_s19, 0 }
 0x1ee   : > { %p917_p2 = scmp.ge.s32.totalorder %s693_s15, 2  ;;  %s358_s4 = scalar_lea.sflag [#allocation4], %s357_s30 }
 0x1f0   : > { %p494_p6 = pnand %p917_p2, %p916_p1 }
 0x1f2   : > { %p495_p12 = pneg %p494_p6 }
 0x1f4   : > { %676 = dma.done.wait (%p495_p12), %s358_s4, 128  }
 0x1f5   : > { %678 = vsyncadd (%p495_p12), %s358_s4, 4294967168  ;;  %p17_p7 = scmp.ge.s32.totalorder %s795_s7, 4   ;;  %s918_s12 = smov %s685_s13 }
 0x1f6   : > { %s919_s13 = smov %s689_s14  ;;  %s920_s14 = smov %s811_s11 }
 0x1f7   : > { %s921_s15 = smov %s795_s7  ;;  %19 = sbr.rel (!%p17_p7) target bundleno = 6 (0x6), region = 85 }
 0x1fc   :  { %363 = vsyncpa [#allocation3], 1 }
 0x1fd   :  { %365 = vsyncpa [#allocation3 + $0x1], 1 }
 0x1fe   :  { %366 = vsyncpa [#allocation6], 1 }
 0x1ff   :  { %367 = vsyncpa [#allocation4], 1 }
 0x200   :  { %369 = vsyncpa [#allocation4 + $0x1], 1 }

</bundles_post_ra>
